<compile_context>
chip_gen: v6e
topology: v6e:2x2x1
jax: 0.10.0
libtpu: 0.0.40
codegen_flags: <defaults>
</compile_context>

<pallas_src>
import functools
import inspect
import math

import jax
import jax.numpy as jnp
from jax.experimental import pallas as pl
from jax.experimental.pallas import tpu as pltpu


# ----------------------------------------------------------------------------
# Trace-time feature / hardware detection
# ----------------------------------------------------------------------------
def _supports_single_buffered_weights():
    if not hasattr(pl, "Buffered"):
        return False
    try:
        return "pipeline_mode" in inspect.signature(pl.BlockSpec).parameters
    except (TypeError, ValueError):
        return False


_SINGLE_BUFFER_WEIGHTS = _supports_single_buffered_weights()


def _detect_vmem_bytes():
    try:
        info = pltpu.get_tpu_info()
        for attr in ("vmem_capacity_bytes", "vmem_bytes", "vmem_size_bytes"):
            v = getattr(info, attr, None)
            if v:
                return int(v)
    except Exception:
        pass
    try:
        kind = jax.devices()[0].device_kind.lower()
        if "v5" in kind or "v6" in kind:
            return 128 << 20
        if "7" in kind:
            return 64 << 20
    except Exception:
        pass
    return 64 << 20  # conservative default: v7x per-TensorCore VMEM


def _vmem_policy():
    phys = _detect_vmem_bytes()
    if phys <= (64 << 20):
        # v7x-class: 64 MiB per TensorCore, 2 TensorCores per chip.
        return {"budget": 40 << 20, "limit_cap": 52 << 20, "two_cores": True}
    # v5e / v6e-class: 128 MiB VMEM, single TensorCore.
    return {"budget": 100 << 20, "limit_cap": 112 << 20, "two_cores": False}


# ----------------------------------------------------------------------------
# Kernel
# ----------------------------------------------------------------------------
def _make_mlp_kernel(n_sub):
    def kernel(x_ref, w1_ref, b1_ref, w2_ref, b2_ref, w3_ref, b3_ref, o_ref):
        sub = x_ref.shape[0] // n_sub
        w1, b1 = w1_ref[...], b1_ref[...]
        w2, b2 = w2_ref[...], b2_ref[...]
        w3, b3 = w3_ref[...], b3_ref[...]
        # Layer-staged over independent batch sub-tiles: the MXU matmul of
        # sub-tile j overlaps the bias-add/ReLU/cast (VPU) epilogue of j-1.
        h1 = []
        for j in range(n_sub):
            xj = x_ref[pl.ds(j * sub, sub), :]
            h = jnp.dot(xj, w1, preferred_element_type=jnp.float32) + b1
            h1.append(jnp.maximum(h, 0.0).astype(w2.dtype))
        h2 = []
        for j in range(n_sub):
            h = jnp.dot(h1[j], w2, preferred_element_type=jnp.float32) + b2
            h2.append(jnp.maximum(h, 0.0).astype(w3.dtype))
        for j in range(n_sub):
            out = jnp.dot(h2[j], w3, preferred_element_type=jnp.float32) + b3
            o_ref[pl.ds(j * sub, sub), :] = out.astype(o_ref.dtype)

    return kernel


# ----------------------------------------------------------------------------
# Helpers
# ----------------------------------------------------------------------------
def _round_up(n, m):
    return ((n + m - 1) // m) * m


def _pad_feature(n):
    """Pad to a multiple of 128; land on 256 when it is nearly free (<=12.5%)."""
    p128 = _round_up(n, 128)
    p256 = _round_up(n, 256)
    if p256 != p128 and p256 <= int(math.ceil(n * 1.125)):
        return p256
    return p128


def _pad2(a, rows, cols):
    r, c = a.shape
    if r == rows and c == cols:
        return a
    return jnp.pad(a, ((0, rows - r), (0, cols - c)))


def _choose_batch_tile(B, in_p, hid_p, out_p, act_bytes, budget,
                       *, two_cores, align):
    """Batch tile: budget-sized, floored at 128 for big batches, 256-preferring."""
    # Resident (single-buffered) weights + f32 biases.
    fixed = act_bytes * (in_p * hid_p + hid_p * hid_p + hid_p * out_p)
    fixed += 4 * (2 * hid_p + out_p)
    if fixed >= budget:
        # TODO(synk): K/N-tiled reduction grid (f32 accumulator, "arbitrary"
        # K axis) for hidden dims whose weights exceed the VMEM budget.
        raise ValueError(
            f"LogModel weights ({fixed} B) exceed the VMEM budget ({budget} B);"
            " the K/N-tiled path is not implemented yet.")

    # Per-batch-row cost: double-buffered x tile, double-buffered f32 out tile,
    # f32 hidden intermediates plus their cast copies for the next matmul.
    per_row = (2 * act_bytes * in_p + 2 * 4 * out_p
               + 2 * 4 * hid_p + 2 * act_bytes * hid_p)
    avail = budget - fixed

    min_tile = 128  # never fall back to tiny-M matmuls for large batches
    budget_tb = max(avail // per_row, min_tile)
    full = _round_up(B, align)
    tb = min(full, budget_tb, 1024)
    if tb < full and tb >= 256:
        tb = (tb // 256) * 256       # full-width passes on the 256-wide MXUs
    else:
        tb = max(align, (tb // align) * align)

    # Split a fits-in-one-tile batch across >=2 grid steps only when there are
    # two TensorCores to shard the "parallel" batch axis across (v7x).
    if two_cores and tb >= B and B >= 2 * align:
        tb = max(align, min(tb, _round_up(pl.cdiv(B, 2), align)))
    return tb


# ----------------------------------------------------------------------------
# pallas_call builder + forward implementation
# ----------------------------------------------------------------------------
def _build_call(kernel, tb, B_pad, in_p, hid_p, out_p, vmem_limit, cost):
    def batch_map(i):
        return (i, 0)

    def const_map(i):
        return (0, 0)

    def wspec(shape):
        # Constant index_map across the grid; single-buffer (when supported)
        # to halve resident weight VMEM — double-buffering buys nothing here.
        if _SINGLE_BUFFER_WEIGHTS:
            return pl.BlockSpec(shape, const_map, pipeline_mode=pl.Buffered(1))
        return pl.BlockSpec(shape, const_map)

    return pl.pallas_call(
        kernel,
        out_shape=jax.ShapeDtypeStruct((B_pad, out_p), jnp.float32),
        grid_spec=pltpu.PrefetchScalarGridSpec(
            num_scalar_prefetch=0,
            grid=(B_pad // tb,),
            in_specs=[
                pl.BlockSpec((tb, in_p), batch_map),   # x tile
                wspec((in_p, hid_p)),                  # w1
                wspec((1, hid_p)),                     # b1
                wspec((hid_p, hid_p)),                 # w2
                wspec((1, hid_p)),                     # b2
                wspec((hid_p, out_p)),                 # w3
                wspec((1, out_p)),                     # b3
            ],
            out_specs=pl.BlockSpec((tb, out_p), batch_map),
        ),
        compiler_params=pltpu.CompilerParams(
            dimension_semantics=("parallel",),
            vmem_limit_bytes=int(vmem_limit),
        ),
        cost_estimate=cost,
    )


def _forward_impl(x, pw, *, out_dim, in_p, hid_p, out_p, act_dtype,
                  budget, limit_cap, two_cores, batch_tile):
    B = x.shape[0]
    act_bytes = jnp.dtype(act_dtype).itemsize
    align = 16 if act_bytes == 2 else 8   # bf16 packs two rows per sublane

    if batch_tile is not None:
        tb = max(align, (int(batch_tile) // align) * align)
    else:
        tb = _choose_batch_tile(B, in_p, hid_p, out_p, act_bytes, budget,
                                two_cores=two_cores, align=align)
    B_pad = _round_up(B, tb)

    # 2-deep in-kernel sub-tile interleave when the tile is large enough.
    n_sub = 2 if (tb % (2 * align) == 0 and tb // 2 >= align) else 1
    kernel = _make_mlp_kernel(n_sub)

    # Zero padding is exact: ReLU(0)=0 and zero rows/cols add nothing.
    x_p = _pad2(x, B_pad, in_p).astype(act_dtype)

    weight_bytes = act_bytes * (in_p * hid_p + hid_p * hid_p + hid_p * out_p)
    bias_bytes = 4 * (2 * hid_p + out_p)
    io_bytes = 2 * act_bytes * tb * in_p + 2 * 4 * tb * out_p
    hidden_bytes = tb * hid_p * (2 * 4 + 2 * act_bytes)  # f32 + cast copies
    need = weight_bytes + bias_bytes + io_bytes + hidden_bytes
    vmem_limit = min(max(int(need * 1.3) + (4 << 20), 32 << 20), limit_cap)

    cost = pl.CostEstimate(
        flops=2 * B_pad * (in_p * hid_p + hid_p * hid_p + hid_p * out_p),
        bytes_accessed=(B_pad * in_p * act_bytes + weight_bytes + bias_bytes
                        + B_pad * out_p * 4),
        transcendentals=0,
    )

    out_full = _build_call(kernel, tb, B_pad, in_p, hid_p, out_p,
                           vmem_limit, cost)(
        x_p, pw["w1"], pw["b1"], pw["w2"], pw["b2"], pw["w3"], pw["b3"])
    return out_full[:B, :out_dim]


# ----------------------------------------------------------------------------
# Public wrapper: prepare weights once, return a jitted forward
# ----------------------------------------------------------------------------
def make_log_model_forward(params, *, use_bf16=True, batch_tile=None):
    """Build a jitted forward for LogModel.

    params: dict with w1,b1,w2,b2,w3,b3 (weights [in, out], biases [1, out]).
    Weights are padded to lane-dense shapes and (optionally) cast to bf16
    exactly ONCE here; the returned callable only pads/casts activations.

    use_bf16=True (default): bf16 weights/activations with f32 MXU
    accumulation — halves weight VMEM/HBM traffic at ~1e-2 relative error.
    Pass use_bf16=False for results that match float32 exactly.
    """
    input_dim, hidden_dim = params["w1"].shape
    output_dim = params["w3"].shape[1]

    in_p = _round_up(input_dim, 128)
    hid_p = _pad_feature(hidden_dim)
    out_p = _pad_feature(output_dim)

    wdt = jnp.bfloat16 if use_bf16 else jnp.float32
    pw = {
        "w1": _pad2(jnp.asarray(params["w1"]), in_p, hid_p).astype(wdt),
        "w2": _pad2(jnp.asarray(params["w2"]), hid_p, hid_p).astype(wdt),
        "w3": _pad2(jnp.asarray(params["w3"]), hid_p, out_p).astype(wdt),
        "b1": _pad2(jnp.asarray(params["b1"]), 1, hid_p).astype(jnp.float32),
        "b2": _pad2(jnp.asarray(params["b2"]), 1, hid_p).astype(jnp.float32),
        "b3": _pad2(jnp.asarray(params["b3"]), 1, out_p).astype(jnp.float32),
    }
    pw = jax.device_put(pw)

    policy = _vmem_policy()
    fwd = jax.jit(functools.partial(
        _forward_impl,
        out_dim=output_dim, in_p=in_p, hid_p=hid_p, out_p=out_p,
        act_dtype=wdt, budget=policy["budget"], limit_cap=policy["limit_cap"],
        two_cores=policy["two_cores"], batch_tile=batch_tile))

    def forward(x):
        return fwd(x, pw)

    return forward


# ----------------------------------------------------------------------------
# Parameter init (matches LogModel.init_params: xavier_uniform on dim>1 params)
# ----------------------------------------------------------------------------
def xavier_uniform(key, fan_in, fan_out, dtype=jnp.float32):
    limit = math.sqrt(6.0 / (fan_in + fan_out))
    return jax.random.uniform(key, (fan_in, fan_out), dtype,
                              minval=-limit, maxval=limit)


def init_log_model_params(key, input_dim, hidden_dim, output_dim):
    k = jax.random.split(key, 6)

    def bias(kb, fan_in, out):
        # PyTorch Linear default bias init U(-1/sqrt(fan_in), 1/sqrt(fan_in)).
        bound = 1.0 / math.sqrt(fan_in)
        return jax.random.uniform(kb, (1, out), jnp.float32,
                                  minval=-bound, maxval=bound)

    return {
        "w1": xavier_uniform(k[0], input_dim, hidden_dim),
        "b1": bias(k[1], input_dim, hidden_dim),
        "w2": xavier_uniform(k[2], hidden_dim, hidden_dim),
        "b2": bias(k[3], hidden_dim, hidden_dim),
        "w3": xavier_uniform(k[4], hidden_dim, output_dim),
        "b3": bias(k[5], hidden_dim, output_dim),
    }


def _reference_forward(x, p):
    h1 = jnp.maximum(x @ p["w1"] + p["b1"], 0.0)
    h2 = jnp.maximum(h1 @ p["w2"] + p["b2"], 0.0)
    return h2 @ p["w3"] + p["b3"]


# ----------------------------------------------------------------------------
# Demo / correctness check
# ----------------------------------------------------------------------------
if __name__ == "__main__":
    batch, input_dim, hidden_dim, output_dim = 8, 32, 64, 16

    key = jax.random.PRNGKey(0)
    kx, kp = jax.random.split(key)
    x = jax.random.normal(kx, (batch, input_dim), jnp.float32)
    params = init_log_model_params(kp, input_dim, hidden_dim, output_dim)

    ref = _reference_forward(x, params)

    # f32 path: must match the reference tightly.
    fwd_f32 = make_log_model_forward(params, use_bf16=False)
    out_f32 = jax.block_until_ready(fwd_f32(x))
    assert out_f32.shape == (batch, output_dim)
    assert jnp.allclose(out_f32, ref, atol=1e-5, rtol=1e-5)

    # bf16 weights/activations with f32 accumulation: documented looser tol.
    fwd_bf16 = make_log_model_forward(params, use_bf16=True)
    out_bf16 = jax.block_until_ready(fwd_bf16(x))
    assert out_bf16.shape == (batch, output_dim)
    assert jnp.allclose(out_bf16, ref, atol=5e-2, rtol=5e-2)

    # A ragged batch to exercise batch padding / tiling on the same weights.
    x2 = jax.random.normal(jax.random.PRNGKey(1), (37, input_dim), jnp.float32)
    out2 = jax.block_until_ready(fwd_f32(x2))
    assert out2.shape == (37, output_dim)
    assert jnp.allclose(out2, _reference_forward(x2, params),
                        atol=1e-5, rtol=1e-5)

    print("KERNEL_OK")
</pallas_src>

<mosaic_0001>
module attributes {stable_mosaic.version = 11 : i64} {
  func.func @kernel(%arg0: i32, %arg1: memref<8x128xf32, #tpu.memory_space<vmem>>, %arg2: memref<128x128xf32, #tpu.memory_space<vmem>>, %arg3: memref<1x128xf32, #tpu.memory_space<vmem>>, %arg4: memref<128x128xf32, #tpu.memory_space<vmem>>, %arg5: memref<1x128xf32, #tpu.memory_space<vmem>>, %arg6: memref<128x128xf32, #tpu.memory_space<vmem>>, %arg7: memref<1x128xf32, #tpu.memory_space<vmem>>, %arg8: memref<8x128xf32, #tpu.memory_space<vmem>>) attributes {dimension_semantics = [#tpu.dimension_semantics<parallel>], iteration_bounds = array<i64: 1>, scalar_prefetch = 0 : i64, scratch_operands = 0 : i64, tpu.core_type = #tpu.core_type<tc>, window_params = [{transform_indices = @transform_0, window_bounds = array<i64: 8, 128>}, {pipeline_mode = #tpu.pipeline_mode<synchronous>, transform_indices = @transform_1, window_bounds = array<i64: 128, 128>}, {pipeline_mode = #tpu.pipeline_mode<synchronous>, transform_indices = @transform_2, window_bounds = array<i64: 1, 128>}, {pipeline_mode = #tpu.pipeline_mode<synchronous>, transform_indices = @transform_3, window_bounds = array<i64: 128, 128>}, {pipeline_mode = #tpu.pipeline_mode<synchronous>, transform_indices = @transform_4, window_bounds = array<i64: 1, 128>}, {pipeline_mode = #tpu.pipeline_mode<synchronous>, transform_indices = @transform_5, window_bounds = array<i64: 128, 128>}, {pipeline_mode = #tpu.pipeline_mode<synchronous>, transform_indices = @transform_6, window_bounds = array<i64: 1, 128>}, {transform_indices = @transform_7, window_bounds = array<i64: 8, 128>}]} {
    %c0 = arith.constant 0 : index
    %c0_0 = arith.constant 0 : index
    %0 = vector.load %arg2[%c0, %c0_0] : memref<128x128xf32, #tpu.memory_space<vmem>>, vector<128x128xf32>
    %c0_1 = arith.constant 0 : index
    %c0_2 = arith.constant 0 : index
    %1 = vector.load %arg3[%c0_1, %c0_2] : memref<1x128xf32, #tpu.memory_space<vmem>>, vector<1x128xf32>
    %c0_3 = arith.constant 0 : index
    %c0_4 = arith.constant 0 : index
    %2 = vector.load %arg4[%c0_3, %c0_4] : memref<128x128xf32, #tpu.memory_space<vmem>>, vector<128x128xf32>
    %c0_5 = arith.constant 0 : index
    %c0_6 = arith.constant 0 : index
    %3 = vector.load %arg5[%c0_5, %c0_6] : memref<1x128xf32, #tpu.memory_space<vmem>>, vector<1x128xf32>
    %c0_7 = arith.constant 0 : index
    %c0_8 = arith.constant 0 : index
    %4 = vector.load %arg6[%c0_7, %c0_8] : memref<128x128xf32, #tpu.memory_space<vmem>>, vector<128x128xf32>
    %c0_9 = arith.constant 0 : index
    %c0_10 = arith.constant 0 : index
    %5 = vector.load %arg7[%c0_9, %c0_10] : memref<1x128xf32, #tpu.memory_space<vmem>>, vector<1x128xf32>
    %c0_11 = arith.constant 0 : index
    %c0_12 = arith.constant 0 : index
    %6 = vector.load %arg1[%c0_11, %c0_12] : memref<8x128xf32, #tpu.memory_space<vmem>>, vector<8x128xf32>
    %cst = arith.constant dense<0.000000e+00> : vector<8x128xf32>
    %7 = tpu.matmul %6, %0, %cst {dimension_numbers = #tpu.dot_dimension_numbers<[1], [0], [0], [1], [0, 0, 1, 1], [], []>} : vector<8x128xf32>, vector<128x128xf32>, vector<8x128xf32> -> vector<8x128xf32>
    %8 = vector.broadcast %1 : vector<1x128xf32> to vector<8x128xf32>
    %9 = arith.addf %7, %8 : vector<8x128xf32>
    %cst_13 = arith.constant 0.000000e+00 : f32
    %10 = vector.broadcast %cst_13 : f32 to vector<8x128xf32>
    %11 = arith.maximumf %9, %10 : vector<8x128xf32>
    %cst_14 = arith.constant dense<0.000000e+00> : vector<8x128xf32>
    %12 = tpu.matmul %11, %2, %cst_14 {dimension_numbers = #tpu.dot_dimension_numbers<[1], [0], [0], [1], [0, 0, 1, 1], [], []>} : vector<8x128xf32>, vector<128x128xf32>, vector<8x128xf32> -> vector<8x128xf32>
    %13 = vector.broadcast %3 : vector<1x128xf32> to vector<8x128xf32>
    %14 = arith.addf %12, %13 : vector<8x128xf32>
    %cst_15 = arith.constant 0.000000e+00 : f32
    %15 = vector.broadcast %cst_15 : f32 to vector<8x128xf32>
    %16 = arith.maximumf %14, %15 : vector<8x128xf32>
    %cst_16 = arith.constant dense<0.000000e+00> : vector<8x128xf32>
    %17 = tpu.matmul %16, %4, %cst_16 {dimension_numbers = #tpu.dot_dimension_numbers<[1], [0], [0], [1], [0, 0, 1, 1], [], []>} : vector<8x128xf32>, vector<128x128xf32>, vector<8x128xf32> -> vector<8x128xf32>
    %18 = vector.broadcast %5 : vector<1x128xf32> to vector<8x128xf32>
    %19 = arith.addf %17, %18 : vector<8x128xf32>
    %c0_17 = arith.constant 0 : index
    %c0_18 = arith.constant 0 : index
    %20 = vector.load %arg8[%c0_17, %c0_18] : memref<8x128xf32, #tpu.memory_space<vmem>>, vector<8x128xf32>
    tpu.vector_store %arg8[%c0_17, %c0_18], %19 {strides = array<i32>} : memref<8x128xf32, #tpu.memory_space<vmem>>, vector<8x128xf32>,
    return
  }
  func.func @transform_0(%arg0: i32) -> (i32, i32) {
    %c0_i32 = arith.constant 0 : i32
    %c0_i32_0 = arith.constant 0 : i32
    return %arg0, %c0_i32 : i32, i32
  }
  func.func @transform_1(%arg0: i32) -> (i32, i32) {
    %c0_i32 = arith.constant 0 : i32
    %c0_i32_0 = arith.constant 0 : i32
    %c0_i32_1 = arith.constant 0 : i32
    return %c0_i32, %c0_i32_0 : i32, i32
  }
  func.func @transform_2(%arg0: i32) -> (i32, i32) {
    %c0_i32 = arith.constant 0 : i32
    %c0_i32_0 = arith.constant 0 : i32
    %c0_i32_1 = arith.constant 0 : i32
    return %c0_i32, %c0_i32_0 : i32, i32
  }
  func.func @transform_3(%arg0: i32) -> (i32, i32) {
    %c0_i32 = arith.constant 0 : i32
    %c0_i32_0 = arith.constant 0 : i32
    %c0_i32_1 = arith.constant 0 : i32
    return %c0_i32, %c0_i32_0 : i32, i32
  }
  func.func @transform_4(%arg0: i32) -> (i32, i32) {
    %c0_i32 = arith.constant 0 : i32
    %c0_i32_0 = arith.constant 0 : i32
    %c0_i32_1 = arith.constant 0 : i32
    return %c0_i32, %c0_i32_0 : i32, i32
  }
  func.func @transform_5(%arg0: i32) -> (i32, i32) {
    %c0_i32 = arith.constant 0 : i32
    %c0_i32_0 = arith.constant 0 : i32
    %c0_i32_1 = arith.constant 0 : i32
    return %c0_i32, %c0_i32_0 : i32, i32
  }
  func.func @transform_6(%arg0: i32) -> (i32, i32) {
    %c0_i32 = arith.constant 0 : i32
    %c0_i32_0 = arith.constant 0 : i32
    %c0_i32_1 = arith.constant 0 : i32
    return %c0_i32, %c0_i32_0 : i32, i32
  }
  func.func @transform_7(%arg0: i32) -> (i32, i32) {
    %c0_i32 = arith.constant 0 : i32
    %c0_i32_0 = arith.constant 0 : i32
    return %arg0, %c0_i32 : i32, i32
  }
}

</mosaic_0001>

<bundles_post_ra>
// kernel: _forward_impl.1
= control target key start
LH: loop header
LB: loop body
LE: loop exit
PB: predicated region body
PF: predicated region fallthrough
CT: control target
= control target key end

     0   :  { %12 = vsyncpa [#allocation3], 0  ;;  %s746_s0 = inlined_call_operand.vmem [shape: f32[8,128], index: 0, kind: input, shape index: {}]   ;;  %s747_s1 = inlined_call_operand.hbm [shape: f32[128,128], index: 1, kind: input, shape index: {}]   ;;  %s748_s2 = inlined_call_operand.vmem [shape: f32[1,128], index: 2, kind: input, shape index: {}]   ;;  %s749_s3 = inlined_call_operand.hbm [shape: f32[128,128], index: 3, kind: input, shape index: {}]   ;;  %s750_s4 = inlined_call_operand.vmem [shape: f32[1,128], index: 4, kind: input, shape index: {}]   ;;  %s751_s5 = inlined_call_operand.hbm [shape: f32[128,128], index: 5, kind: input, shape index: {}]   ;;  %s752_s6 = inlined_call_operand.vmem [shape: f32[1,128], index: 6, kind: input, shape index: {}]   ;;  %s753_s7 = inlined_call_operand.hbm [shape: f32[8,128], index: 7, kind: output, shape index: {}]  }
   0x1   :  { %13 = vsyncpa [#allocation6], 0 }
   0x2   :  { %14 = vsyncpa [#allocation4], 0  ;;  %s620_s24 = smov [#allocation5]   ;;  %s621_s26 = smov [#allocation2]  }
   0x3   :  { %s36_s25 = sshll.u32 %s620_s24, 4  ;;  %s22_s27 = sshll.u32 %s621_s26, 4  ;;  %s37_s25 = int_to_ptr.vmem [resolvable:$true] %s36_s25  ;;  %s23_s27 = int_to_ptr.vmem [resolvable:$true] %s22_s27 }
   0x4   :  { %s542_s28 = scalar_lea.vmem %s37_s25, 2048  ;;  %p547_p1 = scmp.lt.s32.totalorder %s37_s25, %s37_s25 }
   0x5   :  { %p543_p0 = scmp.ne.s32.totalorder %s37_s25, %s542_s28  ;;  %p548_p2 = scmp.lt.s32.totalorder %s542_s28, %s542_s28 }
   0x7   :  { %p549_p3 = por %p548_p2, %p547_p1 }
   0x9   :  { %p550_p4 = pnand %p549_p3, %p543_p0 }
   0xb   :  { %553 = shalt.err (!%p550_p4)
}
   0xc   :  { %s622_s29 = smov 128   ;;  %s623_s30 = smov 8  }
   0xd   :  { %42 = dma.hbm_to_vmem [thread:$0]  %s749_s3, 2048, %s37_s25, [#allocation6], %s622_s29, %s622_s29, %s623_s30  }
   0xe   :  { %s562_s10 = scalar_lea.vmem %s23_s27, 2048  ;;  %p567_p6 = scmp.lt.s32.totalorder %s23_s27, %s23_s27 }
   0xf   :  { %p563_p5 = scmp.ne.s32.totalorder %s23_s27, %s562_s10  ;;  %p568_p7 = scmp.lt.s32.totalorder %s562_s10, %s562_s10 }
  0x11   :  { %p569_p8 = por %p568_p7, %p567_p6 }
  0x13   :  { %p570_p9 = pnand %p569_p8, %p563_p5 }
  0x15   :  { %573 = shalt.err (!%p570_p9)
}
  0x16   :  { %28 = dma.hbm_to_vmem [thread:$0]  %s747_s1, 2048, %s23_s27, [#allocation3], %s622_s29, %s622_s29, %s623_s30  }
  0x17   :  { %s624_s13 = smov [#allocation7]  }
  0x18   :  { %s50_s14 = sshll.u32 %s624_s13, 4  ;;  %s51_s14 = int_to_ptr.vmem [resolvable:$true] %s50_s14 }
  0x19   :  { %s582_s15 = scalar_lea.vmem %s51_s14, 2048  ;;  %p587_p11 = scmp.lt.s32.totalorder %s51_s14, %s51_s14 }
  0x1a   :  { %p583_p10 = scmp.ne.s32.totalorder %s51_s14, %s582_s15  ;;  %p588_p12 = scmp.lt.s32.totalorder %s582_s15, %s582_s15 }
  0x1c   :  { %p589_p13 = por %p588_p12, %p587_p11 }
  0x1e   :  { %p590_p0 = pnand %p589_p13, %p583_p10 }
  0x20   :  { %593 = shalt.err (!%p590_p0)
}
  0x21   :  { %56 = dma.hbm_to_vmem [thread:$0]  %s751_s5, 2048, %s51_s14, [#allocation6], %s622_s29, %s622_s29, %s623_s30  }
  0x22   :  { %614 = dma.done.wait [#allocation3], 2048  }
  0x23   :  { %615 = vsyncadd [#allocation3], 4294965248 }
  0x24   :  { %616 = dma.done.wait [#allocation6], 4096  }
  0x25   :  { %617 = vsyncadd [#allocation6], 4294963200  ;;  %v625_v0 = vmov 0.0   ;;  %vm626_vm0 = vmmov 0   ;;  %v83_v1 = vld [vmem:[#allocation2 + $0x78] sm:$0xff]  ;;  %v82_v2 = vld [vmem:[#allocation2 + $0x70] sm:$0xff] }
  0x26   :  { %421 = vmatprep.subr.mxu0 %v625_v0  ;;  %453 = vmatprep.mubr.msk.f32.mxu0 %vm626_vm0, %v625_v0  ;;  %v81_v3 = vld [vmem:[#allocation2 + $0x68] sm:$0xff]  ;;  %v80_v4 = vld [vmem:[#allocation2 + $0x60] sm:$0xff]  ;;  %v100_v5 = vld [vmem:[#allocation5 + $0x78] sm:$0xff]  ;;  %s627_s21 = smov [#allocation8]  }
  0x27   :  { %456 = vmatprep.subr.mxu1 %v625_v0  ;;  %488 = vmatprep.mubr.msk.f32.mxu1 %vm626_vm0, %v625_v0  ;;  %v79_v6 = vld [vmem:[#allocation2 + $0x58] sm:$0xff]  ;;  %v99_v7 = vld [vmem:[#allocation5 + $0x70] sm:$0xff]  ;;  %v98_v8 = vld [vmem:[#allocation5 + $0x68] sm:$0xff]  ;;  %s357_s22 = sshll.u32 %s627_s21, 4  ;;  %s358_s22 = int_to_ptr.vmem [resolvable:$true] %s357_s22 }
  0x28   :  { %422 = vmatpush3.msra.mxu0 %v83_v1  ;;  %457 = vmatpush3.msra.mxu1 %v100_v5  ;;  %v78_v9 = vld [vmem:[#allocation2 + $0x50] sm:$0xff]  ;;  %v97_v10 = vld [vmem:[#allocation5 + $0x60] sm:$0xff]  ;;  %v77_v11 = vld [vmem:[#allocation2 + $0x48] sm:$0xff]  ;;  %s594_s23 = scalar_lea.vmem %s358_s22, 128  ;;  %p599_p2 = scmp.lt.s32.totalorder %s358_s22, %s358_s22 }
  0x29   :  { %423 = vmatprep.subr.mxu0 %v625_v0  ;;  %458 = vmatprep.subr.mxu1 %v625_v0  ;;  %v96_v12 = vld [vmem:[#allocation5 + $0x58] sm:$0xff]  ;;  %v76_v13 = vld [vmem:[#allocation2 + $0x40] sm:$0xff]  ;;  %v95_v14 = vld [vmem:[#allocation5 + $0x50] sm:$0xff]  ;;  %p595_p1 = scmp.ne.s32.totalorder %s358_s22, %s594_s23  ;;  %p600_p3 = scmp.lt.s32.totalorder %s594_s23, %s594_s23 }
  0x2a   :  { %424 = vmatpush3.msra.mxu0 %v82_v2  ;;  %459 = vmatpush3.msra.mxu1 %v99_v7  ;;  %v75_v15 = vld [vmem:[#allocation2 + $0x38] sm:$0xff]  ;;  %v94_v16 = vld [vmem:[#allocation5 + $0x48] sm:$0xff]  ;;  %v74_v17 = vld [vmem:[#allocation2 + $0x30] sm:$0xff] }
  0x2b   :  { %425 = vmatprep.subr.mxu0 %v625_v0  ;;  %460 = vmatprep.subr.mxu1 %v625_v0  ;;  %v93_v18 = vld [vmem:[#allocation5 + $0x40] sm:$0xff]  ;;  %v73_v19 = vld [vmem:[#allocation2 + $0x28] sm:$0xff]  ;;  %v92_v20 = vld [vmem:[#allocation5 + $0x38] sm:$0xff]  ;;  %p601_p4 = por %p600_p3, %p599_p2 }
  0x2c   :  { %426 = vmatpush3.msra.mxu0 %v81_v3  ;;  %461 = vmatpush3.msra.mxu1 %v98_v8  ;;  %v72_v21 = vld [vmem:[#allocation2 + $0x20] sm:$0xff]  ;;  %v91_v22 = vld [vmem:[#allocation5 + $0x30] sm:$0xff]  ;;  %v71_v23 = vld [vmem:[#allocation2 + $0x18] sm:$0xff] }
  0x2d   :  { %427 = vmatprep.subr.mxu0 %v625_v0  ;;  %462 = vmatprep.subr.mxu1 %v625_v0  ;;  %v90_v24 = vld [vmem:[#allocation5 + $0x28] sm:$0xff]  ;;  %v70_v25 = vld [vmem:[#allocation2 + $0x10] sm:$0xff]  ;;  %v89_v26 = vld [vmem:[#allocation5 + $0x20] sm:$0xff]  ;;  %p602_p5 = pnand %p601_p4, %p595_p1 }
  0x2e   :  { %428 = vmatpush3.msra.mxu0 %v80_v4  ;;  %463 = vmatpush3.msra.mxu1 %v97_v10  ;;  %v69_v27 = vld [vmem:[#allocation2 + $0x8] sm:$0xff]  ;;  %v88_v28 = vld [vmem:[#allocation5 + $0x18] sm:$0xff]  ;;  %v68_v29 = vld [vmem:[#allocation2] sm:$0xff] }
  0x2f   :  { %429 = vmatprep.subr.mxu0 %v625_v0  ;;  %464 = vmatprep.subr.mxu1 %v625_v0  ;;  %v119_v30 = vld [vmem:[%s746_s0] sm:$0xff]  ;;  %v87_v31 = vld [vmem:[#allocation5 + $0x10] sm:$0xff]  ;;  %v86_v32 = vld [vmem:[#allocation5 + $0x8] sm:$0xff] }
  0x30   :  { %430 = vmatpush3.msra.mxu0 %v79_v6  ;;  %465 = vmatpush3.msra.mxu1 %v96_v12  ;;  %v85_v33 = vld [vmem:[#allocation5] sm:$0xff]  ;;  %v117_v34 = vld [vmem:[#allocation7 + $0x78] sm:$0xff]  ;;  %v116_v35 = vld [vmem:[#allocation7 + $0x70] sm:$0xff] }
  0x31   :  { %431 = vmatprep.subr.mxu0 %v625_v0  ;;  %466 = vmatprep.subr.mxu1 %v625_v0  ;;  %v115_v36 = vld [vmem:[#allocation7 + $0x68] sm:$0xff]  ;;  %v114_v37 = vld [vmem:[#allocation7 + $0x60] sm:$0xff]  ;;  %v113_v38 = vld [vmem:[#allocation7 + $0x58] sm:$0xff] }
  0x32   :  { %432 = vmatpush3.msra.mxu0 %v78_v9  ;;  %467 = vmatpush3.msra.mxu1 %v95_v14  ;;  %v112_v39 = vld [vmem:[#allocation7 + $0x50] sm:$0xff]  ;;  %v111_v40 = vld [vmem:[#allocation7 + $0x48] sm:$0xff]  ;;  %v110_v41 = vld [vmem:[#allocation7 + $0x40] sm:$0xff] }
  0x33   :  { %433 = vmatprep.subr.mxu0 %v625_v0  ;;  %468 = vmatprep.subr.mxu1 %v625_v0  ;;  %v109_v42 = vld [vmem:[#allocation7 + $0x38] sm:$0xff]  ;;  %v108_v43 = vld [vmem:[#allocation7 + $0x30] sm:$0xff]  ;;  %v107_v44 = vld [vmem:[#allocation7 + $0x28] sm:$0xff] }
  0x34   :  { %434 = vmatpush3.msra.mxu0 %v77_v11  ;;  %469 = vmatpush3.msra.mxu1 %v94_v16  ;;  %v106_v45 = vld [vmem:[#allocation7 + $0x20] sm:$0xff]  ;;  %v105_v46 = vld [vmem:[#allocation7 + $0x18] sm:$0xff]  ;;  %v104_v52 = vld [vmem:[#allocation7 + $0x10] sm:$0xff] }
  0x35   :  { %435 = vmatprep.subr.mxu0 %v625_v0  ;;  %470 = vmatprep.subr.mxu1 %v625_v0  ;;  %v367_v47 = vld [vmem:[%s748_s2] ss:$0 sm:$0xff]  ;;  %v103_v53 = vld [vmem:[#allocation7 + $0x8] sm:$0xff] }
  0x36   :  { %436 = vmatpush3.msra.mxu0 %v76_v13  ;;  %471 = vmatpush3.msra.mxu1 %v93_v18  ;;  %v102_v54 = vld [vmem:[#allocation7] sm:$0xff] }
  0x37   :  { %437 = vmatprep.subr.mxu0 %v625_v0  ;;  %472 = vmatprep.subr.mxu1 %v625_v0  ;;  %v368_v55 = vld [vmem:[%s750_s4] ss:$0 sm:$0xff] }
  0x38   :  { %438 = vmatpush3.msra.mxu0 %v75_v15  ;;  %473 = vmatpush3.msra.mxu1 %v92_v20  ;;  %v369_v60 = vld [vmem:[%s752_s6] ss:$0 sm:$0xff] }
  0x39   :  { %439 = vmatprep.subr.mxu0 %v625_v0  ;;  %474 = vmatprep.subr.mxu1 %v625_v0 }
  0x3a   :  { %440 = vmatpush3.msra.mxu0 %v74_v17  ;;  %475 = vmatpush3.msra.mxu1 %v91_v22 }
  0x3b   :  { %441 = vmatprep.subr.mxu0 %v625_v0  ;;  %476 = vmatprep.subr.mxu1 %v625_v0 }
  0x3c   :  { %442 = vmatpush3.msra.mxu0 %v73_v19  ;;  %477 = vmatpush3.msra.mxu1 %v90_v24 }
  0x3d   :  { %443 = vmatprep.subr.mxu0 %v625_v0  ;;  %478 = vmatprep.subr.mxu1 %v625_v0 }
  0x3e   :  { %444 = vmatpush3.msra.mxu0 %v72_v21  ;;  %479 = vmatpush3.msra.mxu1 %v89_v26 }
  0x3f   :  { %445 = vmatprep.subr.mxu0 %v625_v0  ;;  %480 = vmatprep.subr.mxu1 %v625_v0 }
  0x40   :  { %446 = vmatpush3.msra.mxu0 %v71_v23  ;;  %481 = vmatpush3.msra.mxu1 %v88_v28 }
  0x41   :  { %447 = vmatprep.subr.mxu0 %v625_v0  ;;  %482 = vmatprep.subr.mxu1 %v625_v0 }
  0x42   :  { %448 = vmatpush3.msra.mxu0 %v70_v25  ;;  %483 = vmatpush3.msra.mxu1 %v87_v31 }
  0x43   :  { %449 = vmatprep.subr.mxu0 %v625_v0  ;;  %484 = vmatprep.subr.mxu1 %v625_v0 }
  0x44   :  { %450 = vmatpush3.msra.mxu0 %v69_v27  ;;  %485 = vmatpush3.msra.mxu1 %v86_v32 }
  0x45   :  { %451 = vmatprep.subr.mxu0 %v625_v0  ;;  %486 = vmatprep.subr.mxu1 %v625_v0 }
  0x46   :  { %452 = vmatpush3.msra.mxu0 %v68_v29  ;;  %487 = vmatpush3.msra.mxu1 %v85_v33 }
  0x47   :  { %454 = vmatmul.mubr.f32.vlgmr.msra.gmra.mxu0 %v119_v30  ;;  %491 = vmatprep.subr.mxu0 %v625_v0 }
  0x48   :  { %523 = vmatprep.mubr.msk.f32.mxu0 %vm626_vm0, %v625_v0  ;;  %492 = vmatpush3.msra.mxu0 %v117_v34 }
  0x49   :  { %493 = vmatprep.subr.mxu0 %v625_v0 }
  0x4a   :  { %494 = vmatpush3.msra.mxu0 %v116_v35 }
  0x4b   :  { %495 = vmatprep.subr.mxu0 %v625_v0 }
  0x4c   :  { %496 = vmatpush3.msra.mxu0 %v115_v36 }
  0x4d   :  { %497 = vmatprep.subr.mxu0 %v625_v0 }
  0x4e   :  { %498 = vmatpush3.msra.mxu0 %v114_v37 }
  0x4f   :  { %499 = vmatprep.subr.mxu0 %v625_v0 }
  0x50   :  { %500 = vmatpush3.msra.mxu0 %v113_v38 }
  0x51   :  { %501 = vmatprep.subr.mxu0 %v625_v0 }
  0x52   :  { %502 = vmatpush3.msra.mxu0 %v112_v39 }
  0x53   :  { %503 = vmatprep.subr.mxu0 %v625_v0 }
  0x54   :  { %504 = vmatpush3.msra.mxu0 %v111_v40 }
  0x55   :  { %505 = vmatprep.subr.mxu0 %v625_v0 }
  0x56   :  { %506 = vmatpush3.msra.mxu0 %v110_v41 }
  0x57   :  { %507 = vmatprep.subr.mxu0 %v625_v0 }
  0x58   :  { %508 = vmatpush3.msra.mxu0 %v109_v42 }
  0x59   :  { %509 = vmatprep.subr.mxu0 %v625_v0 }
  0x5a   :  { %510 = vmatpush3.msra.mxu0 %v108_v43 }
  0x5b   :  { %511 = vmatprep.subr.mxu0 %v625_v0 }
  0x5c   :  { %512 = vmatpush3.msra.mxu0 %v107_v44 }
  0x5d   :  { %513 = vmatprep.subr.mxu0 %v625_v0 }
  0x5e   :  { %514 = vmatpush3.msra.mxu0 %v106_v45 }
  0x5f   :  { %515 = vmatprep.subr.mxu0 %v625_v0 }
  0x60   :  { %516 = vmatpush3.msra.mxu0 %v105_v46 }
  0x61   :  { %517 = vmatprep.subr.mxu0 %v625_v0 }
  0x62   :  { %518 = vmatpush3.msra.mxu0 %v104_v52 }
  0x63   :  { %519 = vmatprep.subr.mxu0 %v625_v0 }
  0x64   :  { %520 = vmatpush3.msra.mxu0 %v103_v53 }
  0x65   :  { %521 = vmatprep.subr.mxu0 %v625_v0 }
  0x66   :  { %522 = vmatpush3.msra.mxu0 %v102_v54 }
 0x107   :  { %v192_v48 = vpop.f32.mrf.mxu0 }
 0x108   :  { %v193_v49 = vadd.f32 %v367_v47, %v192_v48 }
 0x109   :  { %v455_v50 = vpop.f32.mrf.mxu0 }
 0x10a   :  { %v196_v51 = vmax.f32 %v193_v49, 0.0 }
 0x10c   :  { %489 = vmatmul.mubr.f32.vlgmr.msra.gmra.mxu1 %v196_v51 }
 0x1cc   :  { %v269_v56 = vpop.f32.mrf.mxu1 }
 0x1cd   :  { %v270_v57 = vadd.f32 %v368_v55, %v269_v56 }
 0x1ce   :  { %v490_v58 = vpop.f32.mrf.mxu1 }
 0x1cf   :  { %v273_v59 = vmax.f32 %v270_v57, 0.0 }
 0x1d1   :  { %524 = vmatmul.mubr.f32.vlgmr.msra.gmra.mxu0 %v273_v59 }
 0x291   :  { %v346_v61 = vpop.f32.mrf.mxu0 }
 0x292   :  { %v347_v62 = vadd.f32 %v369_v60, %v346_v61 }
 0x293   :  { %v525_v63 = vpop.f32.mrf.mxu0 }
 0x294   :  { %350 = vst [vmem:[#allocation8] sm:$0xff] %v347_v62 }
 0x295   :  { %605 = shalt.err (!%p602_p5)
}
 0x296   :  { %360 = dma.vmem_to_hbm [thread:$0]  %s358_s22, 128, %s753_s7, [#allocation4]  }
 0x297   :  { %618 = dma.done.wait [#allocation4], 128  }
 0x298   :  { %619 = vsyncadd [#allocation4], 4294967168 }
 0x299   :  { %364 = vsyncpa [#allocation3], 1 }
 0x29a   :  { %365 = vsyncpa [#allocation6], 1 }
 0x29b   :  { %366 = vsyncpa [#allocation4], 1 }

</bundles_post_ra>
